<compile_context>
chip_gen: v7x
topology: tpu7x:2x2x1
jax: 0.10.0
libtpu: 0.0.40
codegen_flags: <defaults>
</compile_context>

<pallas_src>
import functools
import math

import jax
import jax.numpy as jnp
from jax.experimental import pallas as pl
from jax.experimental.pallas import tpu as pltpu


# -----------------------------------------------------------------------------
# Tiling helper
# -----------------------------------------------------------------------------
def _pick_tile(n, cap=256):
    """Largest power-of-two tile <= cap dividing n; otherwise the full extent."""
    t = cap
    while t >= 8:
        if t <= n and n % t == 0:
            return t
        t //= 2
    return n


# -----------------------------------------------------------------------------
# Pass 1: fused Q/K/V projection (full-width GEMMs, resident weights)
# -----------------------------------------------------------------------------
def qkv_proj_kernel(xq_ref, xk_ref, xv_ref,
                    wq_ref, wk_ref, wv_ref, bq_ref, bk_ref,
                    q_out, k_out, v_out):
    """Grid = (B, s-tiles).  All weights use constant index maps (resident).

    xq/xk/xv_ref : (ts, D)  activations for this batch / s-tile
    wq/wk/wv_ref : (D, D)   pre-transposed weights (scale folded into wq)
    bq/bk_ref    : (1, D)   biases (bq scaled; bv folded into bo of pass 2)
    q/k/v_out    : (ts, D)  projected activations (compute_dtype)
    """
    q = jnp.dot(xq_ref[...], wq_ref[...],
                preferred_element_type=jnp.float32) + bq_ref[...]
    k = jnp.dot(xk_ref[...], wk_ref[...],
                preferred_element_type=jnp.float32) + bk_ref[...]
    v = jnp.dot(xv_ref[...], wv_ref[...],
                preferred_element_type=jnp.float32)          # bv folded into bo
    q_out[...] = q.astype(q_out.dtype)
    k_out[...] = k.astype(k_out.dtype)
    v_out[...] = v.astype(v_out.dtype)


# -----------------------------------------------------------------------------
# Pass 2: flash-style attention + fused output projection
# -----------------------------------------------------------------------------
def attn_kernel(q_ref, k_ref, v_ref, wo_ref, bo_ref, out_ref,
                m_sc, l_sc, p_acc, o_acc, *, compute_dtype):
    """Grid = (B, q-tiles, H, kv-tiles); (H, kv) are 'arbitrary' reductions.

    q_ref   : (tq, d_k)   projected, pre-scaled, pre-biased queries
    k_ref   : (tk, d_k)   projected keys for this kv tile
    v_ref   : (tk, d_k)   projected values for this kv tile
    wo_ref  : (H, d_k, D) resident per-head output-projection slabs
    bo_ref  : (1, D)      effective output bias (bo + bv @ Wo^T)
    out_ref : (tq, D)
    m/l_sc  : (tq, 1)     online-softmax running max / sum   (f32)
    p_acc   : (tq, d_k)   online-softmax weighted-V accumulator (f32)
    o_acc   : (tq, D)     output-projection accumulator over heads (f32)
    """
    h = pl.program_id(2)
    kv = pl.program_id(3)
    last_h = pl.num_programs(2) - 1
    last_kv = pl.num_programs(3) - 1

    @pl.when((h == 0) & (kv == 0))
    def _init_out():
        o_acc[...] = jnp.broadcast_to(bo_ref[...], o_acc.shape)

    @pl.when(kv == 0)
    def _init_head():
        m_sc[...] = jnp.full(m_sc.shape, -jnp.inf, jnp.float32)
        l_sc[...] = jnp.zeros_like(l_sc)
        p_acc[...] = jnp.zeros_like(p_acc)

    # scores = q @ k^T (1/sqrt(d_k) already folded into the Q projection).
    s = jax.lax.dot_general(q_ref[...], k_ref[...],
                            (((1,), (1,)), ((), ())),
                            preferred_element_type=jnp.float32)      # (tq, tk)

    # Online (streaming) softmax update, all f32.
    m_prev = m_sc[...]
    m_new = jnp.maximum(m_prev, jnp.max(s, axis=-1, keepdims=True))
    alpha = jnp.exp(m_prev - m_new)
    p = jnp.exp(s - m_new)
    l_sc[...] = alpha * l_sc[...] + jnp.sum(p, axis=-1, keepdims=True)
    p_acc[...] = alpha * p_acc[...] + jnp.dot(
        p.astype(compute_dtype), v_ref[...],
        preferred_element_type=jnp.float32)
    m_sc[...] = m_new

    @pl.when(kv == last_kv)
    def _finish_head():
        # Normalize AFTER the PV matmul: (tq, d_k) scale instead of (tq, S).
        attn = p_acc[...] * pl.reciprocal(l_sc[...], approx=True)
        o_acc[...] += jnp.dot(attn.astype(compute_dtype), wo_ref[h],
                              preferred_element_type=jnp.float32)

    @pl.when((kv == last_kv) & (h == last_h))
    def _store():
        out_ref[...] = o_acc[...].astype(out_ref.dtype)


# -----------------------------------------------------------------------------
# Host-side parameter prep: transpose once, fold scale and bv.
# -----------------------------------------------------------------------------
def _prep_params(params, num_heads, compute_dtype):
    wq, bq, wk, bk, wv, bv, wo, bo = params
    D = wq.shape[0]
    d_k = D // num_heads
    scale = 1.0 / math.sqrt(d_k)

    # nn.Linear: y = x @ W.T + b  ->  pre-transpose to (in, out) layout.
    wqT_s = (wq * scale).T.astype(compute_dtype)              # scale folded
    wkT = wk.T.astype(compute_dtype)
    wvT = wv.T.astype(compute_dtype)
    # Per-head output-projection slabs: (H, d_k, D).
    woT_h = wo.T.reshape(num_heads, d_k, D).astype(compute_dtype)

    bq_s = (bq * scale).reshape(1, D).astype(jnp.float32)
    bk_2 = bk.reshape(1, D).astype(jnp.float32)
    # softmax rows sum to ~1  =>  probs @ (xWv + bv) == probs @ (xWv) + bv,
    # so bv's contribution to the output is exactly bv @ Wo^T: fold into bo.
    bo_eff = (bo + bv @ wo.T).reshape(1, D).astype(jnp.float32)

    return wqT_s, wkT, wvT, bq_s, bk_2, woT_h, bo_eff


# -----------------------------------------------------------------------------
# Wrapper
# -----------------------------------------------------------------------------
def multi_head_attention(Q, K, V, params, num_heads,
                         compute_dtype=jnp.float32, out_dtype=None):
    B, S, D = Q.shape
    assert D % num_heads == 0
    H = num_heads
    d_k = D // H
    if out_dtype is None:
        out_dtype = Q.dtype

    wqT_s, wkT, wvT, bq_s, bk_2, woT_h, bo_eff = _prep_params(
        params, H, compute_dtype)

    cbytes = jnp.dtype(compute_dtype).itemsize
    obytes = jnp.dtype(out_dtype).itemsize

    Qc = Q.astype(compute_dtype)
    Kc = K.astype(compute_dtype)
    Vc = V.astype(compute_dtype)

    # ---------------- Pass 1: Q/K/V projection -------------------------------
    ts = _pick_tile(S, cap=256)
    n_s = S // ts

    proj_vmem = int(
        3 * 2 * ts * D * cbytes          # xq/xk/xv tiles (double-buffered)
        + 3 * 2 * ts * D * cbytes        # q/k/v output tiles
        + 3 * 2 * D * D * cbytes         # resident weights (2 buffers each)
        + 2 * 2 * D * 4                  # biases
        + 4 * ts * max(D, 128) * 4)      # f32 working set
    proj_vmem = min(max(2 * proj_vmem, 32 * 2**20), 64 * 2**20)

    x_spec = pl.BlockSpec((None, ts, D), lambda b, si: (b, si, 0))
    w_spec = pl.BlockSpec((D, D), lambda b, si: (0, 0))            # resident
    bias_spec = pl.BlockSpec((1, D), lambda b, si: (0, 0))         # resident
    p_out_spec = pl.BlockSpec((None, ts, D), lambda b, si: (b, si, 0))

    qp, kp, vp = pl.pallas_call(
        qkv_proj_kernel,
        out_shape=(jax.ShapeDtypeStruct((B, S, D), compute_dtype),
                   jax.ShapeDtypeStruct((B, S, D), compute_dtype),
                   jax.ShapeDtypeStruct((B, S, D), compute_dtype)),
        grid=(B, n_s),
        in_specs=[x_spec, x_spec, x_spec,
                  w_spec, w_spec, w_spec,
                  bias_spec, bias_spec],
        out_specs=(p_out_spec, p_out_spec, p_out_spec),
        compiler_params=pltpu.CompilerParams(
            dimension_semantics=("parallel", "parallel"),
            vmem_limit_bytes=proj_vmem),
    )(Qc, Kc, Vc, wqT_s, wkT, wvT, bq_s, bk_2)

    # Head split (pure layout, done once in XLA between the two passes):
    # (B, S, D) -> (B, H, S, d_k).  Cheaper than narrow (N = d_k) per-head
    # projection GEMMs on the 256-wide MXU at realistic D.
    def split_heads(x):
        return x.reshape(B, S, H, d_k).transpose(0, 2, 1, 3)

    qh = split_heads(qp)
    kh = split_heads(kp)
    vh = split_heads(vp)

    # ---------------- Pass 2: flash attention + output projection ------------
    tq = _pick_tile(S, cap=256)   # capped at 256 (v5e vreg / scoped-VMEM)
    tk = _pick_tile(S, cap=256)
    n_q = S // tq
    n_kv = S // tk

    attn_vmem = int(
        2 * tq * d_k * cbytes            # q tile
        + 2 * 2 * tk * d_k * cbytes      # k, v tiles (double-buffered)
        + 2 * H * d_k * D * cbytes       # resident W_o (2 buffers)
        + 2 * D * 4                      # bo
        + 2 * tq * D * obytes            # out tile
        + (2 * tq * 128 + tq * max(d_k, 128) + tq * D) * 4    # scratch
        + 4 * tq * max(tk, 128) * 4)     # softmax working set
    attn_vmem = min(max(2 * attn_vmem, 32 * 2**20), 64 * 2**20)

    q_spec = pl.BlockSpec((None, None, tq, d_k),
                          lambda b, qi, h, kv: (b, h, qi, 0))
    kv_spec = pl.BlockSpec((None, None, tk, d_k),
                           lambda b, qi, h, kv: (b, h, kv, 0))
    wo_spec = pl.BlockSpec((H, d_k, D), lambda b, qi, h, kv: (0, 0, 0))  # resident
    bo_spec = pl.BlockSpec((1, D), lambda b, qi, h, kv: (0, 0))          # resident
    out_spec = pl.BlockSpec((None, tq, D), lambda b, qi, h, kv: (b, qi, 0))

    kernel = functools.partial(attn_kernel, compute_dtype=compute_dtype)

    return pl.pallas_call(
        kernel,
        out_shape=jax.ShapeDtypeStruct((B, S, D), out_dtype),
        grid=(B, n_q, H, n_kv),
        in_specs=[q_spec, kv_spec, kv_spec, wo_spec, bo_spec],
        out_specs=out_spec,
        scratch_shapes=[pltpu.VMEM((tq, 1), jnp.float32),    # running max
                        pltpu.VMEM((tq, 1), jnp.float32),    # running sum
                        pltpu.VMEM((tq, d_k), jnp.float32),  # PV accumulator
                        pltpu.VMEM((tq, D), jnp.float32)],   # out-proj accumulator
        compiler_params=pltpu.CompilerParams(
            dimension_semantics=("parallel", "parallel",
                                 "arbitrary", "arbitrary"),
            vmem_limit_bytes=attn_vmem),
    )(qh, kh, vh, woT_h, bo_eff)


# -----------------------------------------------------------------------------
# Pure-JAX reference (mirrors the PyTorch module exactly)
# -----------------------------------------------------------------------------
def mha_reference(Q, K, V, params, num_heads):
    wq, bq, wk, bk, wv, bv, wo, bo = params
    B, S, D = Q.shape
    d_k = D // num_heads

    def lin(x, w, b):
        return x @ w.T + b

    def split(x):
        return x.reshape(B, S, num_heads, d_k).transpose(0, 2, 1, 3)

    q = split(lin(Q, wq, bq))
    k = split(lin(K, wk, bk))
    v = split(lin(V, wv, bv))
    scores = jnp.einsum('bhqd,bhkd->bhqk', q, k) / math.sqrt(d_k)
    probs = jax.nn.softmax(scores, axis=-1)
    attn = jnp.einsum('bhqk,bhkd->bhqd', probs, v)
    attn = attn.transpose(0, 2, 1, 3).reshape(B, S, D)
    return lin(attn, wo, bo)


# -----------------------------------------------------------------------------
# Main
# -----------------------------------------------------------------------------
if __name__ == "__main__":
    d_model = 32
    num_heads = 4
    batch = 2
    seq = 8

    key = jax.random.PRNGKey(0)
    keys = jax.random.split(key, 12)

    bound = 1.0 / math.sqrt(d_model)  # PyTorch nn.Linear default init range

    def uw(k):
        return jax.random.uniform(k, (d_model, d_model), jnp.float32, -bound, bound)

    def ub(k):
        return jax.random.uniform(k, (d_model,), jnp.float32, -bound, bound)

    params = (uw(keys[0]), ub(keys[1]),   # W_q, b_q
              uw(keys[2]), ub(keys[3]),   # W_k, b_k
              uw(keys[4]), ub(keys[5]),   # W_v, b_v
              uw(keys[6]), ub(keys[7]))   # W_o, b_o

    Q = jax.random.normal(keys[8], (batch, seq, d_model), jnp.float32)
    K = jax.random.normal(keys[9], (batch, seq, d_model), jnp.float32)
    V = jax.random.normal(keys[10], (batch, seq, d_model), jnp.float32)

    ref = mha_reference(Q, K, V, params, num_heads)

    # f32 compute (approx reciprocal -> slightly looser than 1e-5).
    out = multi_head_attention(Q, K, V, params, num_heads,
                               compute_dtype=jnp.float32, out_dtype=jnp.float32)
    out = jax.block_until_ready(out)
    assert out.shape == (batch, seq, d_model)
    assert jnp.allclose(out, ref, atol=2e-3, rtol=2e-3), "f32 mismatch vs reference"

    # bf16 MXU inputs + bf16 writeback, f32 accumulation / f32 softmax.
    out_bf16 = multi_head_attention(Q, K, V, params, num_heads,
                                    compute_dtype=jnp.bfloat16,
                                    out_dtype=jnp.bfloat16)
    out_bf16 = jax.block_until_ready(out_bf16)
    assert jnp.allclose(out_bf16.astype(jnp.float32), ref,
                        atol=6e-2, rtol=6e-2), "bf16 mismatch vs reference"

    print("KERNEL_OK")
</pallas_src>

<mosaic_0001>
module attributes {stable_mosaic.version = 11 : i64} {
  func.func @qkv_proj_kernel(%arg0: i32, %arg1: i32, %arg2: memref<1x8x32xf32, #tpu.memory_space<vmem>>, %arg3: memref<1x8x32xf32, #tpu.memory_space<vmem>>, %arg4: memref<1x8x32xf32, #tpu.memory_space<vmem>>, %arg5: memref<32x32xf32, #tpu.memory_space<vmem>>, %arg6: memref<32x32xf32, #tpu.memory_space<vmem>>, %arg7: memref<32x32xf32, #tpu.memory_space<vmem>>, %arg8: memref<1x32xf32, #tpu.memory_space<vmem>>, %arg9: memref<1x32xf32, #tpu.memory_space<vmem>>, %arg10: memref<1x8x32xf32, #tpu.memory_space<vmem>>, %arg11: memref<1x8x32xf32, #tpu.memory_space<vmem>>, %arg12: memref<1x8x32xf32, #tpu.memory_space<vmem>>) attributes {dimension_semantics = [#tpu.dimension_semantics<parallel>, #tpu.dimension_semantics<parallel>], iteration_bounds = array<i64: 2, 1>, scalar_prefetch = 0 : i64, scratch_operands = 0 : i64, tpu.core_type = #tpu.core_type<tc>, window_params = [{transform_indices = @transform_0, window_bounds = array<i64: 1, 8, 32>}, {transform_indices = @transform_1, window_bounds = array<i64: 1, 8, 32>}, {transform_indices = @transform_2, window_bounds = array<i64: 1, 8, 32>}, {pipeline_mode = #tpu.pipeline_mode<synchronous>, transform_indices = @transform_3, window_bounds = array<i64: 32, 32>}, {pipeline_mode = #tpu.pipeline_mode<synchronous>, transform_indices = @transform_4, window_bounds = array<i64: 32, 32>}, {pipeline_mode = #tpu.pipeline_mode<synchronous>, transform_indices = @transform_5, window_bounds = array<i64: 32, 32>}, {pipeline_mode = #tpu.pipeline_mode<synchronous>, transform_indices = @transform_6, window_bounds = array<i64: 1, 32>}, {pipeline_mode = #tpu.pipeline_mode<synchronous>, transform_indices = @transform_7, window_bounds = array<i64: 1, 32>}, {transform_indices = @transform_8, window_bounds = array<i64: 1, 8, 32>}, {transform_indices = @transform_9, window_bounds = array<i64: 1, 8, 32>}, {transform_indices = @transform_10, window_bounds = array<i64: 1, 8, 32>}]} {
    %c0 = arith.constant 0 : index
    %c0_0 = arith.constant 0 : index
    %c0_1 = arith.constant 0 : index
    %0 = vector.load %arg2[%c0, %c0_0, %c0_1] : memref<1x8x32xf32, #tpu.memory_space<vmem>>, vector<1x8x32xf32>
    %1 = vector.shape_cast %0 : vector<1x8x32xf32> to vector<8x32xf32>
    %c0_2 = arith.constant 0 : index
    %c0_3 = arith.constant 0 : index
    %2 = vector.load %arg5[%c0_2, %c0_3] : memref<32x32xf32, #tpu.memory_space<vmem>>, vector<32x32xf32>
    %cst = arith.constant dense<0.000000e+00> : vector<8x32xf32>
    %3 = tpu.matmul %1, %2, %cst {dimension_numbers = #tpu.dot_dimension_numbers<[1], [0], [0], [1], [0, 0, 1, 1], [], []>} : vector<8x32xf32>, vector<32x32xf32>, vector<8x32xf32> -> vector<8x32xf32>
    %c0_4 = arith.constant 0 : index
    %c0_5 = arith.constant 0 : index
    %4 = vector.load %arg8[%c0_4, %c0_5] : memref<1x32xf32, #tpu.memory_space<vmem>>, vector<1x32xf32>
    %5 = vector.broadcast %4 : vector<1x32xf32> to vector<8x32xf32>
    %6 = arith.addf %3, %5 : vector<8x32xf32>
    %c0_6 = arith.constant 0 : index
    %c0_7 = arith.constant 0 : index
    %c0_8 = arith.constant 0 : index
    %7 = vector.load %arg3[%c0_6, %c0_7, %c0_8] : memref<1x8x32xf32, #tpu.memory_space<vmem>>, vector<1x8x32xf32>
    %8 = vector.shape_cast %7 : vector<1x8x32xf32> to vector<8x32xf32>
    %c0_9 = arith.constant 0 : index
    %c0_10 = arith.constant 0 : index
    %9 = vector.load %arg6[%c0_9, %c0_10] : memref<32x32xf32, #tpu.memory_space<vmem>>, vector<32x32xf32>
    %cst_11 = arith.constant dense<0.000000e+00> : vector<8x32xf32>
    %10 = tpu.matmul %8, %9, %cst_11 {dimension_numbers = #tpu.dot_dimension_numbers<[1], [0], [0], [1], [0, 0, 1, 1], [], []>} : vector<8x32xf32>, vector<32x32xf32>, vector<8x32xf32> -> vector<8x32xf32>
    %c0_12 = arith.constant 0 : index
    %c0_13 = arith.constant 0 : index
    %11 = vector.load %arg9[%c0_12, %c0_13] : memref<1x32xf32, #tpu.memory_space<vmem>>, vector<1x32xf32>
    %12 = vector.broadcast %11 : vector<1x32xf32> to vector<8x32xf32>
    %13 = arith.addf %10, %12 : vector<8x32xf32>
    %c0_14 = arith.constant 0 : index
    %c0_15 = arith.constant 0 : index
    %c0_16 = arith.constant 0 : index
    %14 = vector.load %arg4[%c0_14, %c0_15, %c0_16] : memref<1x8x32xf32, #tpu.memory_space<vmem>>, vector<1x8x32xf32>
    %15 = vector.shape_cast %14 : vector<1x8x32xf32> to vector<8x32xf32>
    %c0_17 = arith.constant 0 : index
    %c0_18 = arith.constant 0 : index
    %16 = vector.load %arg7[%c0_17, %c0_18] : memref<32x32xf32, #tpu.memory_space<vmem>>, vector<32x32xf32>
    %cst_19 = arith.constant dense<0.000000e+00> : vector<8x32xf32>
    %17 = tpu.matmul %15, %16, %cst_19 {dimension_numbers = #tpu.dot_dimension_numbers<[1], [0], [0], [1], [0, 0, 1, 1], [], []>} : vector<8x32xf32>, vector<32x32xf32>, vector<8x32xf32> -> vector<8x32xf32>
    %c0_20 = arith.constant 0 : index
    %c0_21 = arith.constant 0 : index
    %c0_22 = arith.constant 0 : index
    %18 = vector.load %arg10[%c0_20, %c0_21, %c0_22] : memref<1x8x32xf32, #tpu.memory_space<vmem>>, vector<1x8x32xf32>
    %19 = vector.shape_cast %18 : vector<1x8x32xf32> to vector<8x32xf32>
    %20 = vector.shape_cast %6 : vector<8x32xf32> to vector<1x8x32xf32>
    tpu.vector_store %arg10[%c0_20, %c0_21, %c0_22], %20 {strides = array<i32>} : memref<1x8x32xf32, #tpu.memory_space<vmem>>, vector<1x8x32xf32>,
    %c0_23 = arith.constant 0 : index
    %c0_24 = arith.constant 0 : index
    %c0_25 = arith.constant 0 : index
    %21 = vector.load %arg11[%c0_23, %c0_24, %c0_25] : memref<1x8x32xf32, #tpu.memory_space<vmem>>, vector<1x8x32xf32>
    %22 = vector.shape_cast %21 : vector<1x8x32xf32> to vector<8x32xf32>
    %23 = vector.shape_cast %13 : vector<8x32xf32> to vector<1x8x32xf32>
    tpu.vector_store %arg11[%c0_23, %c0_24, %c0_25], %23 {strides = array<i32>} : memref<1x8x32xf32, #tpu.memory_space<vmem>>, vector<1x8x32xf32>,
    %c0_26 = arith.constant 0 : index
    %c0_27 = arith.constant 0 : index
    %c0_28 = arith.constant 0 : index
    %24 = vector.load %arg12[%c0_26, %c0_27, %c0_28] : memref<1x8x32xf32, #tpu.memory_space<vmem>>, vector<1x8x32xf32>
    %25 = vector.shape_cast %24 : vector<1x8x32xf32> to vector<8x32xf32>
    %26 = vector.shape_cast %17 : vector<8x32xf32> to vector<1x8x32xf32>
    tpu.vector_store %arg12[%c0_26, %c0_27, %c0_28], %26 {strides = array<i32>} : memref<1x8x32xf32, #tpu.memory_space<vmem>>, vector<1x8x32xf32>,
    return
  }
  func.func @transform_0(%arg0: i32, %arg1: i32) -> (i32, i32, i32) {
    %c0_i32 = arith.constant 0 : i32
    %c0_i32_0 = arith.constant 0 : i32
    return %arg0, %arg1, %c0_i32 : i32, i32, i32
  }
  func.func @transform_1(%arg0: i32, %arg1: i32) -> (i32, i32, i32) {
    %c0_i32 = arith.constant 0 : i32
    %c0_i32_0 = arith.constant 0 : i32
    return %arg0, %arg1, %c0_i32 : i32, i32, i32
  }
  func.func @transform_2(%arg0: i32, %arg1: i32) -> (i32, i32, i32) {
    %c0_i32 = arith.constant 0 : i32
    %c0_i32_0 = arith.constant 0 : i32
    return %arg0, %arg1, %c0_i32 : i32, i32, i32
  }
  func.func @transform_3(%arg0: i32, %arg1: i32) -> (i32, i32) {
    %c0_i32 = arith.constant 0 : i32
    %c0_i32_0 = arith.constant 0 : i32
    %c0_i32_1 = arith.constant 0 : i32
    return %c0_i32, %c0_i32_0 : i32, i32
  }
  func.func @transform_4(%arg0: i32, %arg1: i32) -> (i32, i32) {
    %c0_i32 = arith.constant 0 : i32
    %c0_i32_0 = arith.constant 0 : i32
    %c0_i32_1 = arith.constant 0 : i32
    return %c0_i32, %c0_i32_0 : i32, i32
  }
  func.func @transform_5(%arg0: i32, %arg1: i32) -> (i32, i32) {
    %c0_i32 = arith.constant 0 : i32
    %c0_i32_0 = arith.constant 0 : i32
    %c0_i32_1 = arith.constant 0 : i32
    return %c0_i32, %c0_i32_0 : i32, i32
  }
  func.func @transform_6(%arg0: i32, %arg1: i32) -> (i32, i32) {
    %c0_i32 = arith.constant 0 : i32
    %c0_i32_0 = arith.constant 0 : i32
    %c0_i32_1 = arith.constant 0 : i32
    return %c0_i32, %c0_i32_0 : i32, i32
  }
  func.func @transform_7(%arg0: i32, %arg1: i32) -> (i32, i32) {
    %c0_i32 = arith.constant 0 : i32
    %c0_i32_0 = arith.constant 0 : i32
    %c0_i32_1 = arith.constant 0 : i32
    return %c0_i32, %c0_i32_0 : i32, i32
  }
  func.func @transform_8(%arg0: i32, %arg1: i32) -> (i32, i32, i32) {
    %c0_i32 = arith.constant 0 : i32
    %c0_i32_0 = arith.constant 0 : i32
    return %arg0, %arg1, %c0_i32 : i32, i32, i32
  }
  func.func @transform_9(%arg0: i32, %arg1: i32) -> (i32, i32, i32) {
    %c0_i32 = arith.constant 0 : i32
    %c0_i32_0 = arith.constant 0 : i32
    return %arg0, %arg1, %c0_i32 : i32, i32, i32
  }
  func.func @transform_10(%arg0: i32, %arg1: i32) -> (i32, i32, i32) {
    %c0_i32 = arith.constant 0 : i32
    %c0_i32_0 = arith.constant 0 : i32
    return %arg0, %arg1, %c0_i32 : i32, i32, i32
  }
}

</mosaic_0001>

<bundles_post_ra>
// kernel: tpu_custom_call.1
= control target key start
LH: loop header
LB: loop body
LE: loop exit
PB: predicated region body
PF: predicated region fallthrough
CT: control target
= control target key end

     0   :  { %s2119_s0 = inlined_call_operand.hbm [shape: f32[2,8,32], index: 0, kind: input, shape index: {}]   ;;  %s2120_s1 = inlined_call_operand.hbm [shape: f32[2,8,32], index: 1, kind: input, shape index: {}]   ;;  %s2121_s2 = inlined_call_operand.hbm [shape: f32[2,8,32], index: 2, kind: input, shape index: {}]   ;;  %s2122_s3 = inlined_call_operand.hbm [shape: f32[32,32], index: 3, kind: input, shape index: {}]   ;;  %s2123_s4 = inlined_call_operand.hbm [shape: f32[32,32], index: 4, kind: input, shape index: {}]   ;;  %s2124_s5 = inlined_call_operand.hbm [shape: f32[32,32], index: 5, kind: input, shape index: {}]   ;;  %s2125_s6 = inlined_call_operand.vmem [shape: f32[1,32], index: 6, kind: input, shape index: {}]   ;;  %s2126_s7 = inlined_call_operand.vmem [shape: f32[1,32], index: 7, kind: input, shape index: {}]   ;;  %s2127_s8 = inlined_call_operand.hbm [shape: f32[2,8,32], index: 8, kind: output, shape index: {0}]   ;;  %s2128_s9 = inlined_call_operand.hbm [shape: f32[2,8,32], index: 9, kind: output, shape index: {1}]   ;;  %s2129_s10 = inlined_call_operand.hbm [shape: f32[2,8,32], index: 10, kind: output, shape index: {2}]  }
   0x1   :  { %2159 = sst [smem:[#allocation30_spill]] %s2120_s1 }
   0x2   :  { %2160 = sst [smem:[#allocation31_spill]] %s2122_s3 }
   0x3   :  { %2161 = sst [smem:[#allocation32_spill]] %s2125_s6 }
   0x4   :  { %2162 = sst [smem:[#allocation33_spill]] %s2126_s7 }
   0x5   :  { %2163 = sst [smem:[#allocation34_spill]] %s2127_s8 }
   0x6   :  { %2164 = sst [smem:[#allocation35_spill]] %s2128_s9 }
   0x7   :  { %2165 = sst [smem:[#allocation36_spill]] %s2129_s10 }
   0x8   :  { %16 = vsyncpa [#allocation3], 0 }
   0x9   :  { %18 = vsyncpa [#allocation3 + $0x1], 0 }
   0xa   :  { %19 = vsyncpa [#allocation6], 0 }
   0xb   :  { %21 = vsyncpa [#allocation6 + $0x1], 0 }
   0xc   :  { %22 = vsyncpa [#allocation9], 0 }
   0xd   :  { %23 = vsyncpa [#allocation12], 0 }
   0xe   :  { %24 = vsyncpa [#allocation4], 0 }
   0xf   :  { %26 = vsyncpa [#allocation4 + $0x1], 0 }
  0x10   :  { %27 = vsyncpa [#allocation15], 0 }
  0x11   :  { %29 = vsyncpa [#allocation15 + $0x1], 0  ;;  %s1676_s13 = smov 0   ;;  %s1678_s14 = smov 0  }
  0x12   :  { %s1680_s15 = smov 0   ;;  %s1682_s16 = smov 0  }
  0x13   :  { %s1684_s17 = smov 0   ;;  %s1686_s18 = smov 0  }
  0x14 LB: > { %2166 = sst [smem:[#allocation23_spill]] %s1585_s13  ;;  %s1707_s19 = sadd.s32 4294967295, %s1605_s18   ;;  %s1605_s18 = sphi %s1686_s18, %s35_s18   ;;  %s1601_s17 = sphi %s1684_s17, %s2214_s17   ;;  %s1597_s16 = sphi %s1682_s16, %s2213_s16   ;;  %s1593_s15 = sphi %s1680_s15, %s2217_s15   ;;  %s1589_s14 = sphi %s1678_s14, %s2216_s14   ;;  %s1585_s13 = sphi %s1676_s13, %s2215_s13  }
  0x15   : > { %2167 = sst [smem:[#allocation24_spill]] %s1601_s17  ;;  %s2130_s20 = sadd.s32 4294967294, %s1605_s18  }
  0x16   : > { %2168 = sst [smem:[#allocation25_spill]] %s1605_s18  ;;  %p69_p0 = scmp.ne.s32.totalorder %s1589_s14, %s1585_s13 }
  0x17   : > { %p2132_p1 = scmp.eq.s32.totalorder %s1707_s19, 0  ;;  %p262_p3 = scmp.eq.s32.totalorder %s2130_s20, 1 }
  0x18   : > { %p1059_p5 = scmp.ge.s32.totalorder %s1605_s18, 1  ;;  %p325_p7 = scmp.lt.s32.totalorder %s1605_s18, 3 }
  0x19   : > { %p1718_p4 = por %p2132_p1, %p69_p0  ;;  %p1723_p6 = por %p262_p3, %p69_p0 }
  0x1a   : > { %p1728_p8 = pnand %p1059_p5, %p325_p7  ;;  %s1607_s24 = smov [#allocation8]  }
  0x1b   : > { %s2169_s21 = scalar_select %p1718_p4, 1, 0 }
  0x1c   : > { %s2170_s22 = scalar_select %p1723_p6, 1, 0 }
  0x1d   : > { %s2172_s23 = scalar_select %p1728_p8, 1, 0 }
  0x1e   : > { %2171 = sst [smem:[#allocation26_spill]] %s2170_s22  ;;  %s337_s25 = sshll.u32 %s1607_s24, 4  ;;  %s338_s25 = int_to_ptr.vmem [resolvable:$true] %s337_s25 }
  0x1f   : > { %p1183_p9 = pneg %p1728_p8  ;;  %s47_s27 = sadd.s32 1, %s1601_s17 }
  0x20   : > { %s2174_s3 = sld [smem:[#allocation31_spill]] }
  0x21   : > { %p1737_p11 = pnand %p1183_p9, %p2132_p1 }
  0x23   : > { %s2173_s26 = scalar_select %p1737_p11, 1, 0 }
  0x24   : > { %p1750_p13 = pneg %p1737_p11 }
  0x26   : > { %s1277_s30 = scalar_lea.hbm %s2174_s3, 512 }
  0x27   : > { %p1278_p12 = scmp.ne.s32.totalorder %s2174_s3, %s1277_s30  ;;  %p1284_p5 = scmp.lt.u32.totalorder %s1277_s30, %s2174_s3 }
  0x28   : > { %s2175_s24 = scalar_select %p1750_p13, 1, 0 }
  0x29   : > { %p1280_p0 = pnand %p1750_p13, %p1278_p12 }
  0x2b   : > { %p1281_p3 = pneg %p1280_p0 }
  0x2d   : > { %p1286_p7 = pnand %p1284_p5, %p1281_p3 }
  0x2f   : > { %1289 = shalt.err (!%p1286_p7)
}
  0x30   : > { %s1290_s28 = scalar_lea.vmem %s338_s25, 512  ;;  %p1298_p2 = scmp.lt.s32.totalorder %s338_s25, %s338_s25 }
  0x31   : > { %p1291_p9 = scmp.ne.s32.totalorder %s338_s25, %s1290_s28  ;;  %p1299_p6 = scmp.lt.s32.totalorder %s1290_s28, %s1290_s28 }
  0x33   : > { %p1293_p10 = pnand %p1291_p9, %p1750_p13  ;;  %p1300_p4 = por %p1299_p6, %p1298_p2 }
  0x35   : > { %p1294_p1 = pneg %p1293_p10 }
  0x37   : > { %p1301_p8 = pnand %p1300_p4, %p1294_p1 }
  0x39   : > { %1304 = shalt.err (!%p1301_p8)
}
  0x3a   : > { %s2136_s29 = smov 128   ;;  %s2138_s20 = smov 8  }
  0x3b   : > { %1186 = dma.hbm_to_vmem [thread:$0]  (!%p1737_p11), %s2174_s3, 512, %s338_s25, [#allocation9], %s2136_s29, %s2136_s29, %s2138_s20  }
  0x3c   : > { %p49_p1 = scmp.ge.s32.totalorder %s47_s27, 2  ;;  %s56_s11 = sadd.s32 1, %s1593_s15 }
  0x3d   : > { %p63_p2 = scmp.ne.s32.totalorder %s1593_s15, %s1589_s14  ;;  %p64_p4 = scmp.eq.s32.totalorder %s1605_s18, 0 }
  0x3e   : > { %s2219_s27 = smov (%p49_p1, %s47_s27), 0  ;;  %p2177_p8 = scmp.eq.s32.totalorder %s1707_s19, 1 }
  0x3f   : > { %2176 = sst [smem:[#allocation27_spill]] %s2219_s27  ;;  %p65_p6 = por %p64_p4, %p63_p2 }
  0x40   : > { %p1777_p10 = por %p2177_p8, %p63_p2  ;;  %s51_s28 = ssub.s32 %s1601_s17, %s2219_s27 }
  0x41   : > { %p1216_p12 = scmp.lt.s32.totalorder %s1605_s18, 2  ;;  %p54_p0 = scmp.eq.s32.totalorder %s51_s28, 0 }
  0x42   : > { %s2178_s12 = scalar_select %p1777_p10, 1, 0 }
  0x43   : > { %s2141_s13 = sand.u32 1, %s1593_s15   ;;  %s1790_s22 = sshll.u32 %s1601_s17, 7 }
  0x44   : > { %2179 = sst [smem:[#allocation28_spill]] %s2178_s12  ;;  %s1787_s25 = sshll.u32 %s2141_s13, 3 }
  0x45   : > { %s1793_s30 = scalar_select %p54_p0, %s1593_s15, %s56_s11  }
  0x46   : > { %p1795_p3 = pnand %p1216_p12, %p65_p6  ;;  %s402_s20 = sand.u32 1, %s1605_s18  }
  0x47   : > { %2180 = sst [smem:[#allocation29_spill]] %s1793_s30  ;;  %s2182_s1 = sld [smem:[#allocation30_spill]] }
  0x48   : > { %s2181_s29 = scalar_select %p1795_p3, 1, 0 }
  0x49   : > { %s406_s13 = scalar_lea.vmem [#allocation5], %s1787_s25  ;;  %s1610_s11 = smov [#allocation10]  }
  0x4a   : > { %s414_s17 = sshll.u32 %s406_s13, 4  ;;  %s1809_s30 = sshll.u32 %s1610_s11, 4  ;;  %s1807_s17 = int_to_ptr.vmem [resolvable:$true] %s414_s17  ;;  %s351_s30 = int_to_ptr.vmem [resolvable:$true] %s1809_s30 }
  0x4b   : > { %s1811_s10 = scalar_lea.sflag [#allocation6], %s402_s20  ;;  %p1817_p7 = pneg %p1795_p3 }
  0x4d   : > { %s1804_s28 = scalar_lea.hbm %s2182_s1, %s1790_s22  ;;  %s1310_s18 = scalar_lea.hbm %s2182_s1, 256 }
  0x4e   : > { %s1305_s9 = scalar_lea.hbm %s1804_s28, 128  ;;  %p1311_p2 = scmp.lt.u32.totalorder %s1804_s28, %s2182_s1 }
  0x4f   : > { %p1306_p5 = scmp.ne.s32.totalorder %s1804_s28, %s1305_s9  ;;  %p1312_p4 = scmp.lt.u32.totalorder %s1310_s18, %s1305_s9 }
  0x50   : > { %s2183_s3 = scalar_select %p1817_p7, 1, 0 }
  0x51   : > { %p1308_p9 = pnand %p1817_p7, %p1306_p5  ;;  %p1313_p6 = por %p1312_p4, %p1311_p2 }
  0x52   : > { %p1314_p8 = scmp.lt.u32.totalorder %s1305_s9, %s1804_s28 }
  0x53   : > { %p1309_p1 = pneg %p1308_p9 }
  0x54   : > { %p1315_p12 = por %p1314_p8, %p1313_p6 }
  0x56   : > { %p1316_p0 = pnand %p1315_p12, %p1309_p1 }
  0x58   : > { %1319 = shalt.err (!%p1316_p0)
}
  0x59   : > { %s1320_s20 = scalar_lea.vmem %s1807_s17, 128  ;;  %s1611_s27 = smov [#allocation5]  }
  0x5a   : > { %p1321_p5 = scmp.ne.s32.totalorder %s1807_s17, %s1320_s20  ;;  %s1325_s13 = sshll.u32 %s1611_s27, 4  ;;  %s1326_s13 = int_to_ptr.vmem [resolvable:$false] %s1325_s13 }
  0x5b   : > { %s1327_s8 = scalar_lea.vmem %s1326_s13, 256  ;;  %p1328_p11 = scmp.lt.s32.totalorder %s1807_s17, %s1326_s13 }
  0x5c   : > { %p1323_p9 = pnand %p1321_p5, %p1817_p7  ;;  %p1329_p13 = scmp.lt.s32.totalorder %s1327_s8, %s1320_s20 }
  0x5e   : > { %p1324_p10 = pneg %p1323_p9  ;;  %p1330_p2 = por %p1329_p13, %p1328_p11 }
  0x60   : > { %p1331_p4 = pnand %p1330_p2, %p1324_p10 }
  0x62   : > { %1334 = shalt.err (!%p1331_p4)
}
  0x63   : > { %1199 = dma.hbm_to_vmem [thread:$0]  (!%p1795_p3), %s1804_s28, 128, %s1807_s17, %s1811_s10  }
  0x64   : > { %s1335_s11 = scalar_lea.hbm %s2123_s4, 512  ;;  %p2184_p11 = scmp.ne.s32.totalorder %s2175_s24, 0 }
  0x65   : > { %p1336_p1 = scmp.ne.s32.totalorder %s2123_s4, %s1335_s11  ;;  %p1342_p6 = scmp.lt.u32.totalorder %s1335_s11, %s2123_s4 }
  0x67   : > { %p1338_p13 = pnand %p1336_p1, %p2184_p11 }
  0x69   : > { %p1339_p10 = pneg %p1338_p13 }
  0x6b   : > { %p1344_p8 = pnand %p1342_p6, %p1339_p10 }
  0x6d   : > { %1347 = shalt.err (!%p1344_p8)
}
  0x6e   : > { %s1348_s8 = scalar_lea.vmem %s351_s30, 512  ;;  %p1356_p9 = scmp.lt.s32.totalorder %s351_s30, %s351_s30 }
  0x6f   : > { %p1349_p12 = scmp.ne.s32.totalorder %s351_s30, %s1348_s8  ;;  %p1357_p2 = scmp.lt.s32.totalorder %s1348_s8, %s1348_s8 }
  0x71   : > { %p1351_p0 = pnand %p1349_p12, %p2184_p11  ;;  %p1358_p4 = por %p1357_p2, %p1356_p9 }
  0x73   : > { %p1352_p5 = pneg %p1351_p0 }
  0x75   : > { %p1359_p3 = pnand %p1358_p4, %p1352_p5 }
  0x77   : > { %1362 = shalt.err (!%p1359_p3)
}
  0x78   : > { %p2185_p1 = scmp.ne.s32.totalorder %s2173_s26, 0  ;;  %s2186_s1 = smov 8  }
  0x79   : > { %s2187_s17 = smov 128   ;;  %s1612_s18 = smov [#allocation11]  }
  0x7a   : > { %1189 = dma.hbm_to_vmem [thread:$0]  (!%p2185_p1), %s2123_s4, 512, %s351_s30, [#allocation9], %s2187_s17, %s2187_s17, %s2186_s1  }
  0x7b   : > { %s363_s11 = sshll.u32 %s1612_s18, 4  ;;  %s1363_s13 = scalar_lea.hbm %s2124_s5, 512  ;;  %s364_s11 = int_to_ptr.vmem [resolvable:$true] %s363_s11 }
  0x7c   : > { %p1364_p3 = scmp.ne.s32.totalorder %s2124_s5, %s1363_s13  ;;  %p1370_p6 = scmp.lt.u32.totalorder %s1363_s13, %s2124_s5 }
  0x7e   : > { %p1366_p13 = pnand %p1364_p3, %p2184_p11 }
  0x80   : > { %p1367_p10 = pneg %p1366_p13 }
  0x82   : > { %p1372_p8 = pnand %p1370_p6, %p1367_p10 }
  0x84   : > { %1375 = shalt.err (!%p1372_p8)
}
  0x85   : > { %s1376_s30 = scalar_lea.vmem %s364_s11, 512  ;;  %p1384_p9 = scmp.lt.s32.totalorder %s364_s11, %s364_s11 }
  0x86   : > { %p1377_p12 = scmp.ne.s32.totalorder %s364_s11, %s1376_s30  ;;  %p1385_p2 = scmp.lt.s32.totalorder %s1376_s30, %s1376_s30 }
  0x88   : > { %p1379_p0 = pnand %p1377_p12, %p2184_p11  ;;  %p1386_p4 = por %p1385_p2, %p1384_p9 }
  0x8a   : > { %p1380_p5 = pneg %p1379_p0 }
  0x8c   : > { %p1387_p7 = pnand %p1386_p4, %p1380_p5 }
  0x8e   : > { %1390 = shalt.err (!%p1387_p7)
}
  0x8f   : > { %1192 = dma.hbm_to_vmem [thread:$0]  (!%p2185_p1), %s2124_s5, 512, %s364_s11, [#allocation12], %s2187_s17, %s2187_s17, %s2186_s1  }
  0x90   : > { %s1888_s28 = scalar_lea.hbm %s2119_s0, %s1790_s22  ;;  %s387_s26 = scalar_lea.vmem [#allocation2], %s1787_s25 }
  0x91   : > { %s395_s9 = sshll.u32 %s387_s26, 4  ;;  %s2188_s18 = sand.u32 1, %s1593_s15   ;;  %s396_s9 = int_to_ptr.vmem [resolvable:$true] %s395_s9 }
  0x92   : > { %s384_s27 = scalar_lea.sflag [#allocation3], %s2188_s18  ;;  %s1391_s20 = scalar_lea.hbm %s1888_s28, 128 }
  0x93   : > { %p1392_p7 = scmp.ne.s32.totalorder %s1888_s28, %s1391_s20  ;;  %p2189_p11 = scmp.ne.s32.totalorder %s2183_s3, 0 }
  0x94   : > { %s1396_s11 = scalar_lea.hbm %s2119_s0, 256  ;;  %p1397_p1 = scmp.lt.u32.totalorder %s1888_s28, %s2119_s0 }
  0x95   : > { %p1394_p3 = pnand %p1392_p7, %p2189_p11  ;;  %p1398_p10 = scmp.lt.u32.totalorder %s1396_s11, %s1391_s20 }
  0x96   : > { %p1400_p8 = scmp.lt.u32.totalorder %s1391_s20, %s1888_s28 }
  0x97   : > { %p1395_p13 = pneg %p1394_p3  ;;  %p1399_p6 = por %p1398_p10, %p1397_p1 }
  0x99   : > { %p1401_p12 = por %p1400_p8, %p1399_p6 }
  0x9b   : > { %p1402_p0 = pnand %p1401_p12, %p1395_p13 }
  0x9d   : > { %1405 = shalt.err (!%p1402_p0)
}
  0x9e   : > { %s1406_s30 = scalar_lea.vmem %s396_s9, 128  ;;  %s1613_s6 = smov [#allocation2]  }
  0x9f   : > { %p1407_p5 = scmp.ne.s32.totalorder %s396_s9, %s1406_s30  ;;  %s1411_s7 = sshll.u32 %s1613_s6, 4  ;;  %s1412_s7 = int_to_ptr.vmem [resolvable:$false] %s1411_s7 }
  0xa0   : > { %s1413_s24 = scalar_lea.vmem %s1412_s7, 256  ;;  %p1414_p4 = scmp.lt.s32.totalorder %s396_s9, %s1412_s7 }
  0xa1   : > { %p1409_p9 = pnand %p1407_p5, %p2189_p11  ;;  %p1415_p7 = scmp.lt.s32.totalorder %s1413_s24, %s1406_s30 }
  0xa3   : > { %p1410_p2 = pneg %p1409_p9  ;;  %p1416_p3 = por %p1415_p7, %p1414_p4 }
  0xa5   : > { %p1417_p1 = pnand %p1416_p3, %p1410_p2 }
  0xa7   : > { %1420 = shalt.err (!%p1417_p1)
}
  0xa8   : > { %p2190_p10 = scmp.ne.s32.totalorder %s2181_s29, 0  ;;  %s1914_s18 = scalar_lea.hbm %s2121_s2, %s1790_s22 }
  0xa9   : > { %s425_s20 = scalar_lea.vmem [#allocation7], %s1787_s25  ;;  %s1421_s17 = scalar_lea.hbm %s1914_s18, 128 }
  0xaa   : > { %1196 = dma.hbm_to_vmem [thread:$0]  (!%p2190_p10), %s1888_s28, 128, %s396_s9, %s384_s27  }
  0xab   : > { %s433_s1 = sshll.u32 %s425_s20, 4  ;;  %p1422_p13 = scmp.ne.s32.totalorder %s1914_s18, %s1421_s17  ;;  %s434_s1 = int_to_ptr.vmem [resolvable:$true] %s433_s1 }
  0xac   : > { %s1426_s28 = scalar_lea.hbm %s2121_s2, 256  ;;  %p1427_p12 = scmp.lt.u32.totalorder %s1914_s18, %s2121_s2 }
  0xad   : > { %p1424_p6 = pnand %p1422_p13, %p2189_p11  ;;  %p1428_p0 = scmp.lt.u32.totalorder %s1426_s28, %s1421_s17 }
  0xae   : > { %p1430_p9 = scmp.lt.u32.totalorder %s1421_s17, %s1914_s18 }
  0xaf   : > { %p1425_p8 = pneg %p1424_p6  ;;  %p1429_p5 = por %p1428_p0, %p1427_p12 }
  0xb1   : > { %p1431_p2 = por %p1430_p9, %p1429_p5 }
  0xb3   : > { %p1432_p4 = pnand %p1431_p2, %p1425_p8 }
  0xb5   : > { %1435 = shalt.err (!%p1432_p4)
}
  0xb6   : > { %s1436_s25 = scalar_lea.vmem %s434_s1, 128  ;;  %s1614_s22 = smov [#allocation7]  }
  0xb7   : > { %p1437_p7 = scmp.ne.s32.totalorder %s434_s1, %s1436_s25  ;;  %s1441_s8 = sshll.u32 %s1614_s22, 4  ;;  %s1442_s8 = int_to_ptr.vmem [resolvable:$false] %s1441_s8 }
  0xb8   : > { %s1443_s30 = scalar_lea.vmem %s1442_s8, 256  ;;  %p1444_p13 = scmp.lt.s32.totalorder %s434_s1, %s1442_s8 }
  0xb9   : > { %p1439_p3 = pnand %p1437_p7, %p2189_p11  ;;  %p1445_p6 = scmp.lt.s32.totalorder %s1443_s30, %s1436_s25 }
  0xbb   : > { %p1440_p1 = pneg %p1439_p3  ;;  %p1446_p10 = por %p1445_p6, %p1444_p13 }
  0xbd   : > { %p1447_p0 = pnand %p1446_p10, %p1440_p1 }
  0xbf   : > { %1450 = shalt.err (!%p1447_p0)
}
  0xc0   : > { %p2191_p12 = scmp.ne.s32.totalorder %s2181_s29, 0  ;;  %p2192_p8 = scmp.ne.s32.totalorder %s2172_s23, 0 }
  0xc1   : > { %s1938_s3 = sand.u32 (!%p2192_p8), 1, %s1589_s14   ;;  %p2193_p11 = scmp.ne.s32.totalorder (!%p2192_p8), %s2169_s21, 0 }
  0xc2   : > { %1202 = dma.hbm_to_vmem [thread:$0]  (!%p2191_p12), %s1914_s18, 128, %s434_s1, %s1811_s10  }
  0xc3   : > { %442 = sbr.rel (%p2192_p8) target bundleno = 503 (0x1f7), region = 52  ;;  %s1941_s6 = sshll.u32 (!%p2192_p8), %s1938_s3, 3 }
  0xc4   : > { %s445_s7 = scalar_lea.sflag (!%p2192_p8), [#allocation3], %s1938_s3  ;;  %s448_s24 = scalar_lea.vmem (!%p2192_p8), [#allocation2], %s1941_s6 }
  0xca   : > { %1560 = dma.done.wait (%p2193_p11), %s445_s7, 128  }
  0xcb   : > { %1562 = vsyncadd (%p2193_p11), %s445_s7, 4294967168  ;;  %s453_s10 = sand.u32 1, %s1707_s19   ;;  %s457_s29 = scalar_lea.vmem [#allocation5], %s1941_s6 }
  0xcc   : > { %s454_s23 = scalar_lea.sflag [#allocation6], %s453_s10 }
  0xcd   : > { %1564 = dma.done.wait (%p2193_p11), %s454_s23, 256  }
  0xce   : > { %1566 = vsyncadd (%p2193_p11), %s454_s23, 4294967040  ;;  %s466_s12 = scalar_lea.vmem [#allocation7], %s1941_s6  ;;  %p2194_p10 = scmp.eq.s32.totalorder %s1707_s19, 0 }
  0xd0   : > { %1568 = dma.done.wait (%p2194_p10), [#allocation9], 1024   ;;  %p2195_p5 = pmov %p2194_p10 }
  0xd2   : > { %1570 = vsyncadd (%p2195_p5), [#allocation9], 4294966272  ;;  %p2196_p9 = pmov %p2195_p5 }
  0xd3   : > { %p2197_p2 = pmov %p2195_p5 }
  0xd4   : > { %1572 = dma.done.wait (%p2196_p9), [#allocation12], 512  }
  0xd5   : > { %1574 = vsyncadd (%p2197_p2), [#allocation12], 4294966784  ;;  %v1615_v0 = vmov 0.0|0.0   ;;  %vm1616_vm0 = vmmov 0   ;;  %v1617_v1 = vmov 0.0   ;;  %v536_v2 = vld [vmem:[#allocation8] sm:$0xff] }
  0xd6   : > { %1141 = vmatprep.subr.bf16.mxu0 %v1615_v0  ;;  %1147 = vmatprep.subr.bf16.mxu1 %v1615_v0  ;;  %v537_v3 = vld [vmem:[#allocation8 + $0x8] sm:$0xff]  ;;  %v538_v4 = vld [vmem:[#allocation8 + $0x10] sm:$0xff]  ;;  %v539_v6 = vld [vmem:[#allocation8 + $0x18] sm:$0xff]  ;;  %vm547_vm1 = vcmask 261120   ;;  %s2198_s18 = sld [smem:[#allocation32_spill]]  ;;  %s1982_s20 = sshll.u32 %s1597_s16, 7 }
  0xd7   : > { %1116 = vmatprep.mubr.msk.f32.mxu0 %vm1616_vm0, %v1617_v1  ;;  %1127 = vmatprep.mubr.msk.f32.mxu1 %vm1616_vm0, %v1617_v1  ;;  %v1142_v5 = vpack.c.bf16 %v537_v3, %v536_v2  ;;  %v622_v7 = vld [vmem:[#allocation10] sm:$0xff]  ;;  %v623_v8 = vld [vmem:[#allocation10 + $0x8] sm:$0xff]  ;;  %v624_v10 = vld [vmem:[#allocation10 + $0x10] sm:$0xff]  ;;  %v1145_v12 = vpack.c.bf16 %v539_v6, %v538_v4  ;;  %s520_s1 = scalar_lea.vmem [#allocation13], %s1941_s6  ;;  %s2199_s28 = sld [smem:[#allocation33_spill]] }
  0xd8   : > { %v1148_v9 = vpack.c.bf16 %v623_v8, %v622_v7  ;;  %v625_v11 = vld [vmem:[#allocation10 + $0x18] sm:$0xff]  ;;  %v707_v14 = vld [vmem:[#allocation11] sm:$0xff]  ;;  %v708_v15 = vld [vmem:[#allocation11 + $0x8] sm:$0xff]  ;;  %s812_s17 = sshll.u32 %s520_s1, 4  ;;  %s527_s9 = scalar_lea.vmem [#allocation14], %s1941_s6  ;;  %s1995_s17 = int_to_ptr.vmem [resolvable:$true] %s812_s17 }
  0xd9   : > { %1143 = vmatpush3.bf16.msra.mxu0 %v1142_v5  ;;  %v1151_v13 = vpack.c.bf16 %v625_v11, %v624_v10  ;;  %v535_v16 = vld [vmem:[%s448_s24] sm:$0xff]  ;;  %v1154_v17 = vpack.c.bf16 %v708_v15, %v707_v14  ;;  %v621_v18 = vld [vmem:[%s457_s29] sm:$0xff]  ;;  %s826_s27 = sshll.u32 %s527_s9, 4  ;;  %s2200_s25 = sld [smem:[#allocation28_spill]]  ;;  %s2003_s27 = int_to_ptr.vmem [resolvable:$true] %s826_s27 }
  0xda   : > { %1144 = vmatprep.subr.bf16.mxu0 %v1615_v0  ;;  %1149 = vmatpush3.bf16.msra.mxu1 %v1148_v9  ;;  %v709_v19 = vld [vmem:[#allocation11 + $0x10] sm:$0xff]  ;;  %v710_v20 = vld [vmem:[#allocation11 + $0x18] sm:$0xff]  ;;  %s2201_s8 = sld [smem:[#allocation34_spill]]  ;;  %s2202_s23 = sld [smem:[#allocation35_spill]] }
  0xdb   : > { %1150 = vmatprep.subr.bf16.mxu1 %v1615_v0  ;;  %v1157_v21 = vpack.c.bf16 %v710_v20, %v709_v19  ;;  %v706_v22 = vld [vmem:[%s466_s12] sm:$0xff]  ;;  %s534_s12 = scalar_lea.vmem [#allocation16], %s1941_s6  ;;  %s788_s26 = scalar_lea.sflag [#allocation4], %s1938_s3 }
  0xdc   : > { %v1080_v23 = vld [vmem:[%s2198_s18] ss:$0 sm:$0xff]  ;;  %s2008_s21 = sshll.u32 %s534_s12, 4  ;;  %s1451_s18 = scalar_lea.vmem %s1995_s17, 128  ;;  %s2067_s21 = int_to_ptr.vmem [resolvable:$true] %s2008_s21 }
  0xdd   : > { %1146 = vmatpush3.bf16.msra.mxu0 %v1145_v12  ;;  %v1082_v24 = vld [vmem:[%s2199_s28] ss:$0 sm:$0xff]  ;;  %p1452_p4 = scmp.ne.s32.totalorder %s1995_s17, %s1451_s18  ;;  %s1618_s11 = smov [#allocation13]  }
  0xde   : > { %1153 = vmatprep.subr.bf16.mxu0 %v1615_v0  ;;  %1152 = vmatpush3.bf16.msra.mxu1 %v1151_v13  ;;  %s1455_s13 = sshll.u32 %s1618_s11, 4  ;;  %s1456_s13 = int_to_ptr.vmem [resolvable:$false] %s1455_s13 }
  0xdf   : > { %p2203_p7 = scmp.ne.s32.totalorder %s2200_s25, 0  ;;  %s1457_s28 = scalar_lea.vmem %s1456_s13, 256 }
  0xe0   : > { %1117 = vmatmul.mubr.msk.f32.vlgmr.msra.gmra.mrb[0].mxu0 %vm547_vm1, %v535_v16  ;;  %s1993_s30 = scalar_lea.hbm %s2201_s8, %s1982_s20  ;;  %s2001_s29 = scalar_lea.hbm %s2202_s23, %s1982_s20 }
  0xe1   : > { %1155 = vmatpush3.bf16.msra.mxu0 %v1154_v17  ;;  %1128 = vmatmul.mubr.msk.f32.vlgmr.msra.gmra.mrb[0].mxu1 %vm547_vm1, %v621_v18  ;;  %p1453_p3 = pnand %p1452_p4, %p2203_p7  ;;  %p1458_p13 = scmp.lt.s32.totalorder %s1995_s17, %s1456_s13 }
  0xe2   : > { %1156 = vmatprep.subr.bf16.mxu0 %v1615_v0  ;;  %1138 = vmatprep.mubr.msk.f32.mxu0 %vm1616_vm0, %v1617_v1  ;;  %p1459_p6 = scmp.lt.s32.totalorder %s1457_s28, %s1451_s18 }
  0xe3   : > { %p1454_p1 = pneg %p1453_p3 }
  0xe4   : > { %p1460_p0 = por %p1459_p6, %p1458_p13 }
  0xe5   : > { %1158 = vmatpush3.bf16.msra.mxu0 %v1157_v21 }
  0xe6   : > { %p1461_p12 = pnand %p1460_p0, %p1454_p1 }
  0xe8   : > { %1139 = vmatmul.mubr.msk.f32.vlgmr.msra.gmra.mrb[2].mxu0 %vm547_vm1, %v706_v22 }
 0x1b3   : > { %v617_v25 = vpop.f32.mrb[0].mxu0 }
 0x1b4   : > { %v618_v26 = vadd.f32 %v1080_v23, %v617_v25  ;;  %v1118_v27 = vpop.f32.mrb[1].mxu0  ;;  %v702_v28 = vpop.f32.mrb[0].mxu1 }
 0x1b5   : > { %v703_v29 = vadd.f32 %v1082_v24, %v702_v28  ;;  %v1129_v30 = vpop.f32.mrb[1].mxu1 }
 0x1b6   : > { %784 = vst.msk [vmem:[%s520_s1] sm:$0xff] %vm547_vm1, %v618_v26 }
 0x1b7   : > { %785 = vst.msk [vmem:[%s527_s9] sm:$0xff] %vm547_vm1, %v703_v29 }
 0x1b8   : > { %1464 = shalt.err (!%p1461_p12)
}
 0x1b9   : > { %s1465_s3 = scalar_lea.hbm %s1993_s30, 128  ;;  %s1469_s16 = scalar_lea.hbm %s2201_s8, 256 }
 0x1ba   : > { %p1466_p8 = scmp.ne.s32.totalorder %s1993_s30, %s1465_s3  ;;  %p1470_p5 = scmp.lt.u32.totalorder %s1993_s30, %s2201_s8 }
 0x1bb   : > { %p1471_p9 = scmp.lt.u32.totalorder %s1469_s16, %s1465_s3  ;;  %p1473_p4 = scmp.lt.u32.totalorder %s1465_s3, %s1993_s30 }
 0x1bc   : > { %p1467_p11 = pnand %p1466_p8, %p2203_p7 }
 0x1bd   : > { %p1472_p2 = por %p1471_p9, %p1470_p5 }
 0x1be   : > { %p1468_p10 = pneg %p1467_p11 }
 0x1bf   : > { %p1474_p3 = por %p1473_p4, %p1472_p2 }
 0x1c1   : > { %p1475_p1 = pnand %p1474_p3, %p1468_p10 }
 0x1c3   : > { %1478 = shalt.err (!%p1475_p1)
}
 0x1c4   : > { %1177 = dma.vmem_to_hbm [thread:$0]  (%p2203_p7), %s1995_s17, 128, %s1993_s30, %s788_s26  }
 0x1c5   : > { %s2036_s24 = scalar_lea.sflag [#allocation15], %s453_s10  ;;  %s1479_s18 = scalar_lea.vmem %s2003_s27, 128 }
 0x1c6   : > { %p1480_p13 = scmp.ne.s32.totalorder %s2003_s27, %s1479_s18  ;;  %s1619_s11 = smov [#allocation14]  }
 0x1c7   : > { %s1483_s13 = sshll.u32 %s1619_s11, 4  ;;  %s1484_s13 = int_to_ptr.vmem [resolvable:$false] %s1483_s13 }
 0x1c8   : > { %p1481_p6 = pnand %p1480_p13, %p2203_p7  ;;  %s1485_s28 = scalar_lea.vmem %s1484_s13, 256 }
 0x1c9   : > { %p1486_p12 = scmp.lt.s32.totalorder %s2003_s27, %s1484_s13  ;;  %p1487_p8 = scmp.lt.s32.totalorder %s1485_s28, %s1479_s18 }
 0x1ca   : > { %p1482_p0 = pneg %p1481_p6 }
 0x1cb   : > { %p1488_p11 = por %p1487_p8, %p1486_p12 }
 0x1cd   : > { %p1489_p10 = pnand %p1488_p11, %p1482_p0 }
 0x1cf   : > { %1492 = shalt.err (!%p1489_p10)
}
 0x1d0   : > { %s1493_s19 = scalar_lea.hbm %s2001_s29, 128  ;;  %s1497_s30 = scalar_lea.hbm %s2202_s23, 256 }
 0x1d1   : > { %p1494_p5 = scmp.ne.s32.totalorder %s2001_s29, %s1493_s19  ;;  %p1498_p4 = scmp.lt.u32.totalorder %s2001_s29, %s2202_s23 }
 0x1d2   : > { %p1499_p3 = scmp.lt.u32.totalorder %s1497_s30, %s1493_s19  ;;  %p1501_p13 = scmp.lt.u32.totalorder %s1493_s19, %s2001_s29 }
 0x1d3   : > { %p1495_p9 = pnand %p1494_p5, %p2203_p7 }
 0x1d4   : > { %p1500_p1 = por %p1499_p3, %p1498_p4 }
 0x1d5   : > { %p1496_p2 = pneg %p1495_p9 }
 0x1d6   : > { %p1502_p6 = por %p1501_p13, %p1500_p1 }
 0x1d8   : > { %p1503_p0 = pnand %p1502_p6, %p1496_p2 }
 0x1da   : > { %1506 = shalt.err (!%p1503_p0)
}
 0x1db   : > { %1178 = dma.vmem_to_hbm [thread:$0]  (%p2203_p7), %s2003_s27, 128, %s2001_s29, %s2036_s24   ;;  %v780_v31 = vpop.f32.mrb[2].mxu0 }
 0x1dc   : > { %s2204_s16 = sld [smem:[#allocation36_spill]]  ;;  %786 = vst.msk [vmem:[%s534_s12] sm:$0xff] %vm547_vm1, %v780_v31  ;;  %v1140_v32 = vpop.f32.mrb[3].mxu0  ;;  %s1507_s18 = scalar_lea.vmem %s2067_s21, 128 }
 0x1dd   : > { %p1508_p12 = scmp.ne.s32.totalorder %s2067_s21, %s1507_s18  ;;  %s1620_s27 = smov [#allocation16]  }
 0x1de   : > { %s1511_s29 = sshll.u32 %s1620_s27, 4  ;;  %s1512_s29 = int_to_ptr.vmem [resolvable:$false] %s1511_s29 }
 0x1df   : > { %p1509_p8 = pnand %p1508_p12, %p2203_p7  ;;  %p1514_p10 = scmp.lt.s32.totalorder %s2067_s21, %s1512_s29 }
 0x1e1   : > { %p1510_p11 = pneg %p1509_p8 }
 0x1e2   : > { %s2205_s22 = smov %s2204_s16  ;;  %s2064_s7 = scalar_lea.hbm %s2204_s16, %s1982_s20 }
 0x1e3   : > { %s1513_s20 = scalar_lea.vmem %s1512_s29, 256 }
 0x1e4   : > { %p1515_p5 = scmp.lt.s32.totalorder %s1513_s20, %s1507_s18 }
 0x1e6   : > { %p1516_p9 = por %p1515_p5, %p1514_p10 }
 0x1e8   : > { %p1517_p2 = pnand %p1516_p9, %p1510_p11 }
 0x1ea   : > { %1520 = shalt.err (!%p1517_p2)
}
 0x1eb   : > { %s1521_s6 = scalar_lea.hbm %s2064_s7, 128  ;;  %s1525_s13 = scalar_lea.hbm %s2205_s22, 256 }
 0x1ec   : > { %p1522_p4 = scmp.ne.s32.totalorder %s2064_s7, %s1521_s6  ;;  %p1526_p13 = scmp.lt.u32.totalorder %s2064_s7, %s2205_s22 }
 0x1ed   : > { %p1527_p6 = scmp.lt.u32.totalorder %s1525_s13, %s1521_s6  ;;  %p1529_p12 = scmp.lt.u32.totalorder %s1521_s6, %s2064_s7 }
 0x1ee   : > { %p1523_p3 = pnand %p1522_p4, %p2203_p7 }
 0x1ef   : > { %p1528_p0 = por %p1527_p6, %p1526_p13 }
 0x1f0   : > { %p1524_p1 = pneg %p1523_p3 }
 0x1f1   : > { %p1530_p8 = por %p1529_p12, %p1528_p0 }
 0x1f3   : > { %p1531_p11 = pnand %p1530_p8, %p1524_p1 }
 0x1f5   : > { %1534 = shalt.err (!%p1531_p11)
}
 0x1f6   : > { %1179 = dma.vmem_to_hbm [thread:$0]  (%p2203_p7), %s2067_s21, 128, %s2064_s7, %s2036_s24  }
 0x1f7 PF: > { %s2206_s10 = sld [smem:[#allocation23_spill]]  ;;  %s2207_s17 = sld [smem:[#allocation26_spill]] }
 0x1f8   : > { %s2208_s30 = sld [smem:[#allocation25_spill]] }
 0x1fd   : > { %s852_s26 = sand.u32 1, %s2206_s10   ;;  %p2209_p10 = scmp.ne.s32.totalorder %s2207_s17, 0 }
 0x1fe   : > { %p2210_p5 = scmp.ge.s32.totalorder %s2208_s30, 2  ;;  %s853_s3 = scalar_lea.sflag [#allocation4], %s852_s26 }
 0x200   : > { %p1204_p9 = pnand %p2210_p5, %p2209_p10 }
 0x202   : > { %1576 = dma.done.wait (!%p1204_p9), %s853_s3, 128  }
 0x203   : > { %1578 = vsyncadd (!%p1204_p9), %s853_s3, 4294967168  ;;  %s2211_s1 = sadd.s32 4294967294, %s2208_s30  }
 0x204   : > { %s861_s9 = sand.u32 1, %s2211_s1  }
 0x205   : > { %s862_s16 = scalar_lea.sflag [#allocation15], %s861_s9 }
 0x206   : > { %1580 = dma.done.wait (!%p1204_p9), %s862_s16, 256  }
 0x207   : > { %1582 = vsyncadd (!%p1204_p9), %s862_s16, 4294967040  ;;  %s35_s18 = sadd.s32 1, %s2208_s30   ;;  %s2212_s25 = sld [smem:[#allocation29_spill]] }
 0x208   : > { %p32_p7 = scmp.ge.s32.totalorder %s35_s18, 4   ;;  %s2213_s16 = sld [smem:[#allocation24_spill]] }
 0x209   : > { %s2214_s17 = sld [smem:[#allocation27_spill]]  ;;  %s2215_s13 = smov %s1589_s14 }
 0x20a   : > { %s2216_s14 = smov %s1593_s15  ;;  %34 = sbr.rel (!%p32_p7) target bundleno = 20 (0x14), region = 165 }
 0x20d   : > { %s2217_s15 = smov %s2212_s25 }
 0x211   :  { %876 = vsyncpa [#allocation3], 1 }
 0x212   :  { %878 = vsyncpa [#allocation3 + $0x1], 1 }
 0x213   :  { %879 = vsyncpa [#allocation6], 1 }
 0x214   :  { %881 = vsyncpa [#allocation6 + $0x1], 1 }
 0x215   :  { %882 = vsyncpa [#allocation9], 1 }
 0x216   :  { %883 = vsyncpa [#allocation12], 1 }
 0x217   :  { %884 = vsyncpa [#allocation4], 1 }
 0x218   :  { %886 = vsyncpa [#allocation4 + $0x1], 1 }
 0x219   :  { %887 = vsyncpa [#allocation15], 1 }
 0x21a   :  { %889 = vsyncpa [#allocation15 + $0x1], 1 }

</bundles_post_ra>
